<compile_context>
chip_gen: v6e
topology: v6e:2x2x1
jax: 0.10.0
libtpu: 0.0.40
codegen_flags: <defaults>
</compile_context>

<pallas_src>
import jax
import jax.numpy as jnp
from jax.experimental import pallas as pl
from jax.experimental.pallas import tpu as pltpu

LANES = 128  # lane-dense output width (last dim multiple of 128)


def nsp_kernel(x_ref, w_ref, b_ref, o_ref):
    # Hot path: MXU matmul with f32 accumulate + VPU bias add.
    acc = jnp.dot(x_ref[...], w_ref[...], preferred_element_type=jnp.float32)
    o_ref[...] = (acc + b_ref[...]).astype(o_ref.dtype)


def next_sentence_pred(x, w, b, *, block_m=512, compute_dtype=jnp.bfloat16):
    """BERT NSP head: logits = x @ w.T + b.

    x: (B, H) float, w: (2, H) (PyTorch nn.Linear layout), b: (2,).
    Returns (B, 2) float32 logits.
    """
    B, H = x.shape
    assert w.shape == (2, H) and b.shape == (2,)

    # ---- wrapper-side layout plumbing (cheap; fused by XLA) -----------------
    # Pre-transpose weight and zero-pad out-dim 2 -> 128 so the kernel writes a
    # lane-dense tile; padded columns are zero-filled so cols 2..127 carry only
    # the (zero-padded) bias and are discarded by the final slice.
    w_t = jnp.zeros((H, LANES), dtype=compute_dtype)
    w_t = w_t.at[:, :2].set(jnp.transpose(w).astype(compute_dtype))
    b_pad = jnp.zeros((1, LANES), dtype=jnp.float32)
    b_pad = b_pad.at[:, :2].set(b.astype(jnp.float32).reshape(1, 2))

    # Tile the batch axis. Pad B up to a multiple of the tile so every block is
    # full (block_m is a multiple of 8; H is the full second extent).
    tm = min(block_m, max(8, ((B + 7) // 8) * 8))
    padded_b = pl.cdiv(B, tm) * tm
    x_c = x.astype(compute_dtype)
    if padded_b != B:
        x_c = jnp.pad(x_c, ((0, padded_b - B), (0, 0)))

    grid = (padded_b // tm,)

    cost = pl.CostEstimate(
        flops=2 * padded_b * H * LANES,
        bytes_accessed=(padded_b * H * x_c.dtype.itemsize
                        + H * LANES * w_t.dtype.itemsize
                        + padded_b * LANES * 4),
        transcendentals=0,
    )

    out = pl.pallas_call(
        nsp_kernel,
        out_shape=jax.ShapeDtypeStruct((padded_b, LANES), jnp.float32),
        grid_spec=pltpu.PrefetchScalarGridSpec(
            num_scalar_prefetch=0,
            grid=grid,
            in_specs=[
                pl.BlockSpec((tm, H), lambda i: (i, 0)),      # X rows: pipelined
                pl.BlockSpec((H, LANES), lambda i: (0, 0)),   # weights: resident
                pl.BlockSpec((1, LANES), lambda i: (0, 0)),   # bias: resident
            ],
            out_specs=pl.BlockSpec((tm, LANES), lambda i: (i, 0)),
        ),
        compiler_params=pltpu.CompilerParams(
            dimension_semantics=("parallel",),       # 2-TC sharding on v7x
            vmem_limit_bytes=64 * 1024 * 1024,       # within v7x's 64 MiB VMEM
        ),
        cost_estimate=cost,
    )(x_c, w_t, b_pad)

    # Slice back to the real (B, 2) logits.
    return out[:B, :2]
    # TODO(synk): at production scale, fuse this head into the upstream
    # pooler/encoder kernel to avoid a separate HBM round-trip of CLS rows.


if __name__ == "__main__":
    key = jax.random.PRNGKey(0)
    k_x, k_w, k_b = jax.random.split(key, 3)

    batch = 8
    num_inputs = 32  # hidden size (small test shape)

    # Deterministic synthetic parameters (mimic nn.Linear default uniform init).
    bound = 1.0 / jnp.sqrt(jnp.float32(num_inputs))
    w = jax.random.uniform(k_w, (2, num_inputs), jnp.float32, -bound, bound)
    b = jax.random.uniform(k_b, (2,), jnp.float32, -bound, bound)
    x = jax.random.normal(k_x, (batch, num_inputs), jnp.float32)

    out = next_sentence_pred(x, w, b)
    out = jax.block_until_ready(out)
    assert out.shape == (batch, 2)

    # Reference with matching bf16 input quantization (f32 accumulate) -> tight.
    xq = x.astype(jnp.bfloat16).astype(jnp.float32)
    wq = w.astype(jnp.bfloat16).astype(jnp.float32)
    ref_q = xq @ wq.T + b
    assert jnp.allclose(out, ref_q, atol=1e-4, rtol=1e-4), "mismatch vs bf16-quantized reference"

    # Loose sanity check against full-f32 nn.Linear semantics.
    ref_f32 = x @ w.T + b
    assert jnp.allclose(out, ref_f32, atol=5e-2, rtol=5e-2), "mismatch vs f32 reference"

    print("KERNEL_OK")
</pallas_src>

<mosaic_0001>
module attributes {stable_mosaic.version = 11 : i64} {
  func.func @nsp_kernel(%arg0: i32, %arg1: memref<8x32xbf16, #tpu.memory_space<vmem>>, %arg2: memref<32x128xbf16, #tpu.memory_space<vmem>>, %arg3: memref<1x128xf32, #tpu.memory_space<vmem>>, %arg4: memref<8x128xf32, #tpu.memory_space<vmem>>) attributes {dimension_semantics = [#tpu.dimension_semantics<parallel>], iteration_bounds = array<i64: 1>, scalar_prefetch = 0 : i64, scratch_operands = 0 : i64, tpu.core_type = #tpu.core_type<tc>, window_params = [{transform_indices = @transform_0, window_bounds = array<i64: 8, 32>}, {pipeline_mode = #tpu.pipeline_mode<synchronous>, transform_indices = @transform_1, window_bounds = array<i64: 32, 128>}, {pipeline_mode = #tpu.pipeline_mode<synchronous>, transform_indices = @transform_2, window_bounds = array<i64: 1, 128>}, {transform_indices = @transform_3, window_bounds = array<i64: 8, 128>}]} {
    %c0 = arith.constant 0 : index
    %c0_0 = arith.constant 0 : index
    %0 = vector.load %arg1[%c0, %c0_0] : memref<8x32xbf16, #tpu.memory_space<vmem>>, vector<8x32xbf16>
    %c0_1 = arith.constant 0 : index
    %c0_2 = arith.constant 0 : index
    %1 = vector.load %arg2[%c0_1, %c0_2] : memref<32x128xbf16, #tpu.memory_space<vmem>>, vector<32x128xbf16>
    %cst = arith.constant dense<0.000000e+00> : vector<8x128xf32>
    %2 = tpu.matmul %0, %1, %cst {dimension_numbers = #tpu.dot_dimension_numbers<[1], [0], [0], [1], [0, 0, 1, 1], [], []>} : vector<8x32xbf16>, vector<32x128xbf16>, vector<8x128xf32> -> vector<8x128xf32>
    %c0_3 = arith.constant 0 : index
    %c0_4 = arith.constant 0 : index
    %3 = vector.load %arg3[%c0_3, %c0_4] : memref<1x128xf32, #tpu.memory_space<vmem>>, vector<1x128xf32>
    %4 = vector.broadcast %3 : vector<1x128xf32> to vector<8x128xf32>
    %5 = arith.addf %2, %4 : vector<8x128xf32>
    %c0_5 = arith.constant 0 : index
    %c0_6 = arith.constant 0 : index
    %6 = vector.load %arg4[%c0_5, %c0_6] : memref<8x128xf32, #tpu.memory_space<vmem>>, vector<8x128xf32>
    tpu.vector_store %arg4[%c0_5, %c0_6], %5 {strides = array<i32>} : memref<8x128xf32, #tpu.memory_space<vmem>>, vector<8x128xf32>,
    return
  }
  func.func @transform_0(%arg0: i32) -> (i32, i32) {
    %c0_i32 = arith.constant 0 : i32
    %c0_i32_0 = arith.constant 0 : i32
    return %arg0, %c0_i32 : i32, i32
  }
  func.func @transform_1(%arg0: i32) -> (i32, i32) {
    %c0_i32 = arith.constant 0 : i32
    %c0_i32_0 = arith.constant 0 : i32
    %c0_i32_1 = arith.constant 0 : i32
    return %c0_i32, %c0_i32_0 : i32, i32
  }
  func.func @transform_2(%arg0: i32) -> (i32, i32) {
    %c0_i32 = arith.constant 0 : i32
    %c0_i32_0 = arith.constant 0 : i32
    %c0_i32_1 = arith.constant 0 : i32
    return %c0_i32, %c0_i32_0 : i32, i32
  }
  func.func @transform_3(%arg0: i32) -> (i32, i32) {
    %c0_i32 = arith.constant 0 : i32
    %c0_i32_0 = arith.constant 0 : i32
    return %arg0, %c0_i32 : i32, i32
  }
}

</mosaic_0001>

<bundles_post_ra>
// kernel: tpu_custom_call.1
= control target key start
LH: loop header
LB: loop body
LE: loop exit
PB: predicated region body
PF: predicated region fallthrough
CT: control target
= control target key end

     0   :  { %8 = vsyncpa [#allocation3], 0  ;;  %s256_s0 = inlined_call_operand.hbm [shape: bf16[8,32], index: 0, kind: input, shape index: {}]   ;;  %s257_s1 = inlined_call_operand.hbm [shape: bf16[32,128], index: 1, kind: input, shape index: {}]   ;;  %s258_s2 = inlined_call_operand.vmem [shape: f32[1,128], index: 2, kind: input, shape index: {}]   ;;  %s259_s3 = inlined_call_operand.hbm [shape: f32[8,128], index: 3, kind: output, shape index: {}]  }
   0x1   :  { %9 = vsyncpa [#allocation6], 0 }
   0x2   :  { %10 = vsyncpa [#allocation4], 0  ;;  %s217_s12 = smov [#allocation2]   ;;  %s218_s14 = smov [#allocation5]  }
   0x3   :  { %s17_s13 = sshll.u32 %s217_s12, 4  ;;  %s26_s15 = sshll.u32 %s218_s14, 4  ;;  %s18_s13 = int_to_ptr.vmem [resolvable:$true] %s17_s13  ;;  %s27_s15 = int_to_ptr.vmem [resolvable:$true] %s26_s15 }
   0x4   :  { %s159_s16 = scalar_lea.vmem %s18_s13, 64  ;;  %p164_p1 = scmp.lt.s32.totalorder %s18_s13, %s18_s13 }
   0x5   :  { %p160_p0 = scmp.ne.s32.totalorder %s18_s13, %s159_s16  ;;  %p165_p2 = scmp.lt.s32.totalorder %s159_s16, %s159_s16 }
   0x7   :  { %p166_p3 = por %p165_p2, %p164_p1 }
   0x9   :  { %p167_p4 = pnand %p166_p3, %p160_p0 }
   0xb   :  { %170 = shalt.err (!%p167_p4)
}
   0xc   :  { %20 = dma.hbm_to_vmem [thread:$0]  %s256_s0, 64, %s18_s13, [#allocation3]  }
   0xd   :  { %s179_s19 = scalar_lea.vmem %s27_s15, 256  ;;  %p184_p6 = scmp.lt.s32.totalorder %s27_s15, %s27_s15 }
   0xe   :  { %p180_p5 = scmp.ne.s32.totalorder %s27_s15, %s179_s19  ;;  %p185_p7 = scmp.lt.s32.totalorder %s179_s19, %s179_s19 }
  0x10   :  { %p186_p8 = por %p185_p7, %p184_p6 }
  0x12   :  { %p187_p9 = pnand %p186_p8, %p180_p5 }
  0x14   :  { %190 = shalt.err (!%p187_p9)
}
  0x15   :  { %s219_s20 = smov 64   ;;  %s220_s21 = smov 4  }
  0x16   :  { %32 = dma.hbm_to_vmem [thread:$0]  %s257_s1, 256, %s27_s15, [#allocation6], %s219_s20, %s219_s20, %s220_s21  }
  0x17   :  { %211 = dma.done.wait [#allocation3], 64  }
  0x18   :  { %212 = vsyncadd [#allocation3], 4294967232 }
  0x19   :  { %213 = dma.done.wait [#allocation6], 256  }
  0x1a   :  { %214 = vsyncadd [#allocation6], 4294967040  ;;  %v221_v0 = vmov 0.0   ;;  %vm222_vm0 = vmmov 0   ;;  %v149_v1 = vld [vmem:[#allocation5 + $0x8] sm:$0xff]   ;;  %v150_v2 = vld [vmem:[#allocation5] sm:$0xff]  }
  0x1b   :  { %134 = vmatprep.subr.bf16.mxu0 %v221_v0  ;;  %138 = vmatprep.mubr.msk.bf16.mxu0 %vm222_vm0, %v221_v0  ;;  %v42_v3 = vld [vmem:[#allocation2] sm:$0xf]  ;;  %vm66_vm1 = vcmask 261120   ;;  %s223_s1 = smov [#allocation7]  }
  0x1c   :  { %135 = vmatpush3.bf16.msra.mxu0 %v149_v1  ;;  %v127_v4 = vld [vmem:[%s258_s2] ss:$0 sm:$0xff]  ;;  %s117_s25 = sshll.u32 %s223_s1, 4  ;;  %s118_s25 = int_to_ptr.vmem [resolvable:$true] %s117_s25 }
  0x1d   :  { %136 = vmatprep.subr.bf16.mxu0 %v221_v0  ;;  %s191_s26 = scalar_lea.vmem %s118_s25, 128  ;;  %p196_p11 = scmp.lt.s32.totalorder %s118_s25, %s118_s25 }
  0x1e   :  { %p192_p10 = scmp.ne.s32.totalorder %s118_s25, %s191_s26  ;;  %p197_p12 = scmp.lt.s32.totalorder %s191_s26, %s191_s26 }
  0x20   :  { %137 = vmatpush3.bf16.msra.mxu0 %v150_v2  ;;  %p198_p13 = por %p197_p12, %p196_p11 }
  0x22   :  { %p199_p0 = pnand %p198_p13, %p192_p10 }
  0x23   :  { %139 = vmatmul.mubr.msk.bf16.vlgmr.msra.gmra.mxu0 %vm66_vm1, %v42_v3 }
  0xe3   :  { %v104_v5 = vpop.f32.mrf.mxu0 }
  0xe4   :  { %v105_v6 = vadd.f32 %v127_v4, %v104_v5 }
  0xe5   :  { %v140_v7 = vpop.f32.mrf.mxu0 }
  0xe6   :  { %110 = vst [vmem:[#allocation7] sm:$0xff] %v105_v6 }
  0xe7   :  { %v107_v8 = vpop.f32.mrf.mxu0 }
  0xe8   :  { %202 = shalt.err (!%p199_p0)
}
  0xe9   :  { %120 = dma.vmem_to_hbm [thread:$0]  %s118_s25, 128, %s259_s3, [#allocation4]   ;;  %v141_v9 = vpop.f32.mrf.mxu0 }
  0xea   :  { %215 = dma.done.wait [#allocation4], 128  }
  0xeb   :  { %216 = vsyncadd [#allocation4], 4294967168 }
  0xec   :  { %124 = vsyncpa [#allocation3], 1 }
  0xed   :  { %125 = vsyncpa [#allocation6], 1 }
  0xee   :  { %126 = vsyncpa [#allocation4], 1 }

</bundles_post_ra>
